<compile_context>
chip_gen: v6e
topology: v6e:2x2x1
jax: 0.10.0
libtpu: 0.0.40
codegen_flags: <defaults>
</compile_context>

<pallas_src>
import jax
import jax.numpy as jnp
from jax.experimental import pallas as pl
from jax.experimental.pallas import tpu as pltpu


def _round_up(x: int, m: int) -> int:
    return (x + m - 1) // m * m


def _discriminator_kernel(x_ref, w1_ref, b1_ref, w2t_ref, b2_ref, o_ref):
    # ---- Layer 1: Linear(D -> H).  x arrives in its native dtype (no wrapper
    # convert/pad pass); the bf16 cast is free VPU work in a DMA-bound pipeline.
    x_bf = x_ref[...].astype(jnp.bfloat16)                     # (TB, D) bf16
    h = jnp.dot(x_bf, w1_ref[...],
                preferred_element_type=jnp.float32)            # (TB, H) f32 accum
    h = h + b1_ref[...]                                        # (1, H) broadcast
    h = jnp.where(h >= 0.0, h, 0.01 * h)                       # LeakyReLU(0.01), f32 VPU

    # ---- Layer 2: Linear(H -> 1), lane-dense.  Contract H of bf16 h against
    # the bf16 replicated w2^T so per-row logits come out as (rows, TB) rather
    # than a lane-sparse (TB, 1) column; only row 0 is used.
    logits = jax.lax.dot_general(
        w2t_ref[...], h.astype(jnp.bfloat16),
        dimension_numbers=(((1,), (1,)), ((), ())),
        preferred_element_type=jnp.float32)                    # (8, TB), rows identical
    logit = logits[0:1, :] + b2_ref[0, 0]                      # (1, TB); b2 from SMEM

    # ---- Sigmoid: exp and approx reciprocal both run on the otherwise-idle EUP.
    y = pl.reciprocal(1.0 + jnp.exp(-logit), approx=True)
    o_ref[...] = y.astype(o_ref.dtype)


def discriminator_forward(x, w1, b1, w2, b2, *, block_b=8192):
    """x: (B, D); w1: (D, H); b1: (H,); w2: (H, 1); b2: (1,). Returns (B, 1) f32."""
    B, D = x.shape
    H = w1.shape[1]
    assert w1.shape == (D, H) and w2.shape == (H, 1)
    assert b1.shape == (H,) and b2.shape == (1,)

    x_itemsize = jnp.dtype(x.dtype).itemsize

    # --- Generation-aware VMEM budget (v5e/v6e: 128 MiB physical, v7x: 64 MiB
    # per TC).  Tiles get at most half the physical VMEM (cap 32 MiB) and we
    # raise the scoped limit explicitly so v5e's 16 MiB default doesn't force
    # tiny tiles.
    try:
        vmem_phys = int(pltpu.get_tpu_info().vmem_capacity_bytes)
    except Exception:
        vmem_phys = 64 * 1024 * 1024  # smallest generation (v7x per-TC)
    tile_budget = min(vmem_phys // 2, 32 * 1024 * 1024)
    vmem_limit = min(tile_budget + 16 * 1024 * 1024, vmem_phys * 3 // 4)

    # --- Batch tile: multiple of 256 (MXU row block; also satisfies the
    # (8, 128) constraints on the x block and the lane-dense output).
    TB = min(_round_up(block_b, 256), _round_up(B, 256))
    # v7x megacore: give the "parallel" batch axis >= 2 grid steps for moderate
    # B so both TensorCores take work (harmless on single-TC generations).
    if _round_up(B, 256) >= 512:
        TB = min(TB, _round_up(pl.cdiv(B, 2), 256))

    def _tile_bytes(tb):
        return (2 * tb * D * x_itemsize      # double-buffered x tiles (native dtype)
                + 2 * D * H * 2              # bf16 w1 (counted double-buffered)
                + 2 * tb * 4                 # double-buffered (1, TB) f32 output
                + 2 * H * 4 + 2 * 8 * H * 2)  # b1 + replicated bf16 w2^T

    while TB > 256 and _tile_bytes(TB) > tile_budget:
        TB -= 256

    G = pl.cdiv(B, TB)  # ragged last block; padded rows computed then discarded

    # Small, one-off weight preps (negligible HBM traffic).
    w1_bf = w1.astype(jnp.bfloat16)
    b1_2d = b1.reshape(1, H).astype(jnp.float32)
    w2t8 = jnp.broadcast_to(w2.reshape(1, H), (8, H)).astype(jnp.bfloat16)
    b2_sc = b2.reshape(1, 1).astype(jnp.float32)               # scalar -> SMEM

    cost = pl.CostEstimate(
        flops=2 * B * D * H + 2 * B * H,
        transcendentals=B,
        bytes_accessed=B * D * x_itemsize + D * H * 2 + H * 4 + 8 * H * 2 + B * 4,
    )

    out = pl.pallas_call(
        _discriminator_kernel,
        out_shape=jax.ShapeDtypeStruct((G, 1, TB), jnp.float32),
        grid=(G,),
        in_specs=[
            # x: batch-tiled, auto double-buffered.  (pipeline_mode=pl.Buffered(3)
            # is a further knob if profiles show exposed DMA.)
            pl.BlockSpec((TB, D), lambda i: (i, 0)),
            pl.BlockSpec((D, H), lambda i: (0, 0)),              # w1 (bf16): VMEM-resident
            pl.BlockSpec((1, H), lambda i: (0, 0)),              # b1: VMEM-resident
            pl.BlockSpec((8, H), lambda i: (0, 0)),              # w2^T (bf16): VMEM-resident
            pl.BlockSpec(memory_space=pltpu.MemorySpace.SMEM),   # b2: SMEM scalar
        ],
        out_specs=pl.BlockSpec((None, 1, TB), lambda i: (i, 0, 0)),  # lane-dense logits
        compiler_params=pltpu.CompilerParams(
            dimension_semantics=("parallel",),
            vmem_limit_bytes=vmem_limit,
        ),
        cost_estimate=cost,
    )(x, w1_bf, b1_2d, w2t8, b2_sc)

    # (G, 1, TB) lane-dense tiles -> (B, 1); drop the ragged-block padding.
    return out.reshape(G * TB, 1)[:B]


def init_discriminator_params(key, image_dim, hidden=128):
    """Deterministic init mimicking nn.Linear default (uniform +-1/sqrt(fan_in))."""
    k1, k2, k3, k4 = jax.random.split(key, 4)
    bound1 = 1.0 / jnp.sqrt(image_dim)
    w1 = jax.random.uniform(k1, (image_dim, hidden), jnp.float32, -bound1, bound1)
    b1 = jax.random.uniform(k2, (hidden,), jnp.float32, -bound1, bound1)
    bound2 = 1.0 / jnp.sqrt(hidden)
    w2 = jax.random.uniform(k3, (hidden, 1), jnp.float32, -bound2, bound2)
    b2 = jax.random.uniform(k4, (1,), jnp.float32, -bound2, bound2)
    return w1, b1, w2, b2


if __name__ == "__main__":
    key = jax.random.PRNGKey(0)
    k_x, k_p = jax.random.split(key)

    batch = 8
    image_dim = 256  # flattened image features

    x = jax.random.normal(k_x, (batch, image_dim), dtype=jnp.float32)
    w1, b1, w2, b2 = init_discriminator_params(k_p, image_dim)

    out = jax.block_until_ready(discriminator_forward(x, w1, b1, w2, b2))
    assert out.shape == (batch, 1)

    # Tight check vs. a precision-matched reference (bf16 MXU operands on both
    # layers, f32 accumulation); tolerance absorbs the approximate EUP reciprocal.
    h = jnp.dot(x.astype(jnp.bfloat16), w1.astype(jnp.bfloat16),
                preferred_element_type=jnp.float32) + b1
    h = jnp.where(h >= 0.0, h, 0.01 * h)
    logit = jnp.dot(h.astype(jnp.bfloat16), w2.astype(jnp.bfloat16),
                    preferred_element_type=jnp.float32) + b2
    ref = jax.nn.sigmoid(logit)
    assert jnp.allclose(out, ref, atol=5e-3, rtol=0.0), \
        float(jnp.max(jnp.abs(out - ref)))

    # Loose check vs. the full-f32 PyTorch-equivalent forward.
    h32 = jnp.dot(x, w1, precision=jax.lax.Precision.HIGHEST) + b1
    h32 = jnp.where(h32 >= 0.0, h32, 0.01 * h32)
    ref32 = jax.nn.sigmoid(
        jnp.dot(h32, w2, precision=jax.lax.Precision.HIGHEST) + b2)
    assert jnp.allclose(out, ref32, atol=5e-2, rtol=0.0)

    print("KERNEL_OK")
</pallas_src>

<mosaic_0001>
module attributes {stable_mosaic.version = 11 : i64} {
  func.func @_discriminator_kernel(%arg0: i32, %arg1: memref<256x256xf32, #tpu.memory_space<vmem>>, %arg2: memref<256x128xbf16, #tpu.memory_space<vmem>>, %arg3: memref<1x128xf32, #tpu.memory_space<vmem>>, %arg4: memref<8x128xbf16, #tpu.memory_space<vmem>>, %arg5: memref<1x1xf32, #tpu.memory_space<smem>>, %arg6: memref<1x1x256xf32, #tpu.memory_space<vmem>>) attributes {dimension_semantics = [#tpu.dimension_semantics<parallel>], iteration_bounds = array<i64: 1>, scalar_prefetch = 0 : i64, scratch_operands = 0 : i64, tpu.core_type = #tpu.core_type<tc>, window_params = [{transform_indices = @transform_0, window_bounds = array<i64: 256, 256>}, {pipeline_mode = #tpu.pipeline_mode<synchronous>, transform_indices = @transform_1, window_bounds = array<i64: 256, 128>}, {pipeline_mode = #tpu.pipeline_mode<synchronous>, transform_indices = @transform_2, window_bounds = array<i64: 1, 128>}, {pipeline_mode = #tpu.pipeline_mode<synchronous>, transform_indices = @transform_3, window_bounds = array<i64: 8, 128>}, {transform_indices = @transform_4, window_bounds = array<i64: 1, 1>}, {transform_indices = @transform_5, window_bounds = array<i64: 1, 1, 256>}]} {
    %c0 = arith.constant 0 : index
    %c0_0 = arith.constant 0 : index
    %0 = vector.load %arg1[%c0, %c0_0] : memref<256x256xf32, #tpu.memory_space<vmem>>, vector<256x256xf32>
    %1 = arith.truncf %0 : vector<256x256xf32> to vector<256x256xbf16>
    %c0_1 = arith.constant 0 : index
    %c0_2 = arith.constant 0 : index
    %2 = vector.load %arg2[%c0_1, %c0_2] : memref<256x128xbf16, #tpu.memory_space<vmem>>, vector<256x128xbf16>
    %cst = arith.constant dense<0.000000e+00> : vector<256x128xf32>
    %3 = tpu.matmul %1, %2, %cst {dimension_numbers = #tpu.dot_dimension_numbers<[1], [0], [0], [1], [0, 0, 1, 1], [], []>} : vector<256x256xbf16>, vector<256x128xbf16>, vector<256x128xf32> -> vector<256x128xf32>
    %c0_3 = arith.constant 0 : index
    %c0_4 = arith.constant 0 : index
    %4 = vector.load %arg3[%c0_3, %c0_4] : memref<1x128xf32, #tpu.memory_space<vmem>>, vector<1x128xf32>
    %5 = vector.broadcast %4 : vector<1x128xf32> to vector<256x128xf32>
    %6 = arith.addf %3, %5 : vector<256x128xf32>
    %cst_5 = arith.constant 0.000000e+00 : f32
    %7 = vector.broadcast %cst_5 : f32 to vector<256x128xf32>
    %8 = arith.cmpf oge, %6, %7 : vector<256x128xf32>
    %cst_6 = arith.constant 0.00999999977 : f32
    %9 = vector.broadcast %cst_6 : f32 to vector<256x128xf32>
    %10 = arith.mulf %9, %6 : vector<256x128xf32>
    %11 = arith.select %8, %6, %10 : vector<256x128xi1>, vector<256x128xf32>
    %c0_7 = arith.constant 0 : index
    %c0_8 = arith.constant 0 : index
    %12 = vector.load %arg4[%c0_7, %c0_8] : memref<8x128xbf16, #tpu.memory_space<vmem>>, vector<8x128xbf16>
    %13 = arith.truncf %11 : vector<256x128xf32> to vector<256x128xbf16>
    %cst_9 = arith.constant dense<0.000000e+00> : vector<8x256xf32>
    %14 = tpu.matmul %12, %13, %cst_9 {dimension_numbers = #tpu.dot_dimension_numbers<[1], [1], [0], [0], [0, 0, 1, 0], [], []>} : vector<8x128xbf16>, vector<256x128xbf16>, vector<8x256xf32> -> vector<8x256xf32>
    %15 = vector.extract_strided_slice %14 {offsets = [0, 0], sizes = [1, 256], strides = [1, 1]} : vector<8x256xf32> to vector<1x256xf32>
    %c0_10 = arith.constant 0 : index
    %c0_11 = arith.constant 0 : index
    %16 = memref.load %arg5[%c0_10, %c0_11] : memref<1x1xf32, #tpu.memory_space<smem>>
    %17 = vector.broadcast %16 : f32 to vector<1x256xf32>
    %18 = arith.addf %15, %17 : vector<1x256xf32>
    %cst_12 = arith.constant 0.000000e+00 : f32
    %19 = vector.broadcast %cst_12 : f32 to vector<1x256xf32>
    %20 = arith.subf %19, %18 : vector<1x256xf32>
    %21 = math.exp %20 : vector<1x256xf32>
    %cst_13 = arith.constant 1.000000e+00 : f32
    %22 = vector.broadcast %cst_13 : f32 to vector<1x256xf32>
    %23 = arith.addf %22, %21 : vector<1x256xf32>
    %24 = tpu.reciprocal %23 {approx = true} : vector<1x256xf32> -> vector<1x256xf32>
    %c0_14 = arith.constant 0 : index
    %c0_15 = arith.constant 0 : index
    %c0_16 = arith.constant 0 : index
    %25 = vector.load %arg6[%c0_14, %c0_15, %c0_16] : memref<1x1x256xf32, #tpu.memory_space<vmem>>, vector<1x1x256xf32>
    %26 = vector.shape_cast %25 : vector<1x1x256xf32> to vector<1x256xf32>
    %27 = vector.shape_cast %24 : vector<1x256xf32> to vector<1x1x256xf32>
    tpu.vector_store %arg6[%c0_14, %c0_15, %c0_16], %27 {strides = array<i32>} : memref<1x1x256xf32, #tpu.memory_space<vmem>>, vector<1x1x256xf32>,
    return
  }
  func.func @transform_0(%arg0: i32) -> (i32, i32) {
    %c0_i32 = arith.constant 0 : i32
    %c0_i32_0 = arith.constant 0 : i32
    return %arg0, %c0_i32 : i32, i32
  }
  func.func @transform_1(%arg0: i32) -> (i32, i32) {
    %c0_i32 = arith.constant 0 : i32
    %c0_i32_0 = arith.constant 0 : i32
    %c0_i32_1 = arith.constant 0 : i32
    return %c0_i32, %c0_i32_0 : i32, i32
  }
  func.func @transform_2(%arg0: i32) -> (i32, i32) {
    %c0_i32 = arith.constant 0 : i32
    %c0_i32_0 = arith.constant 0 : i32
    %c0_i32_1 = arith.constant 0 : i32
    return %c0_i32, %c0_i32_0 : i32, i32
  }
  func.func @transform_3(%arg0: i32) -> (i32, i32) {
    %c0_i32 = arith.constant 0 : i32
    %c0_i32_0 = arith.constant 0 : i32
    %c0_i32_1 = arith.constant 0 : i32
    return %c0_i32, %c0_i32_0 : i32, i32
  }
  func.func @transform_4(%arg0: i32) -> (i32, i32) {
    %c0_i32 = arith.constant 0 : i32
    %c0_i32_0 = arith.constant 0 : i32
    %c0_i32_1 = arith.constant 0 : i32
    return %c0_i32, %c0_i32_0 : i32, i32
  }
  func.func @transform_5(%arg0: i32) -> (i32, i32, i32) {
    %c0_i32 = arith.constant 0 : i32
    %c0_i32_0 = arith.constant 0 : i32
    %c0_i32_1 = arith.constant 0 : i32
    return %arg0, %c0_i32, %c0_i32_0 : i32, i32, i32
  }
}

</mosaic_0001>

<bundles_post_ra>
// kernel: tpu_custom_call.1
= control target key start
LH: loop header
LB: loop body
LE: loop exit
PB: predicated region body
PF: predicated region fallthrough
CT: control target
= control target key end

     0   :  { %11 = vsyncpa [#allocation4], 0  ;;  %s1094_s0 = inlined_call_operand.hbm [shape: f32[8,256], index: 0, kind: input, shape index: {}]   ;;  %s1095_s1 = inlined_call_operand.hbm [shape: bf16[256,128], index: 1, kind: input, shape index: {}]   ;;  %s1096_s2 = inlined_call_operand.vmem [shape: f32[1,128], index: 2, kind: input, shape index: {}]   ;;  %s1097_s3 = inlined_call_operand.vmem [shape: bf16[8,128], index: 3, kind: input, shape index: {}]   ;;  %s1098_s4 = inlined_call_operand.<no memory space> [shape: f32[1,1], index: 4, kind: input, shape index: {}]   ;;  %s1099_s5 = inlined_call_operand.hbm [shape: f32[1,1,256], index: 5, kind: output, shape index: {}]  }
   0x1   :  { %12 = vsyncpa [#allocation7], 0 }
   0x2   :  { %13 = vsyncpa [#allocation5], 0 }
   0x3   :  { %18 = vsyncadd [#allocation4], 7936  ;;  %s895_s18 = smov [#allocation3]  }
   0x4   :  { %s19_s19 = sshll.u32 %s895_s18, 4  ;;  %s20_s19 = int_to_ptr.vmem [resolvable:$true] %s19_s19 }
   0x5   :  { %s837_s20 = scalar_lea.vmem %s20_s19, 256  ;;  %s841_s21 = scalar_lea.vmem %s20_s19, 8192 }
   0x6   :  { %p838_p0 = scmp.ne.s32.totalorder %s20_s19, %s837_s20  ;;  %p842_p1 = scmp.lt.s32.totalorder %s20_s19, %s20_s19 }
   0x7   :  { %p843_p2 = scmp.lt.s32.totalorder %s841_s21, %s837_s20 }
   0x9   :  { %p844_p3 = por %p843_p2, %p842_p1 }
   0xb   :  { %p845_p4 = pnand %p844_p3, %p838_p0 }
   0xd   :  { %848 = shalt.err (!%p845_p4)
}
   0xe   :  { %s896_s22 = smov 256   ;;  %s897_s23 = smov 16  }
   0xf   :  { %25 = dma.hbm_to_vmem [thread:$0]  %s1094_s0, 256, %s20_s19, [#allocation4], %s896_s22, %s896_s22, %s897_s23  }
  0x10   :  { %s898_s26 = smov [#allocation6]  }
  0x11   :  { %s31_s27 = sshll.u32 %s898_s26, 4  ;;  %s32_s27 = int_to_ptr.vmem [resolvable:$true] %s31_s27 }
  0x12   :  { %s857_s28 = scalar_lea.vmem %s32_s27, 2048  ;;  %p862_p6 = scmp.lt.s32.totalorder %s32_s27, %s32_s27 }
  0x13   :  { %p858_p5 = scmp.ne.s32.totalorder %s32_s27, %s857_s28  ;;  %p863_p7 = scmp.lt.s32.totalorder %s857_s28, %s857_s28 }
  0x15   :  { %p864_p8 = por %p863_p7, %p862_p6 }
  0x17   :  { %p865_p9 = pnand %p864_p8, %p858_p5 }
  0x19   :  { %868 = shalt.err (!%p865_p9)
}
  0x1a   :  { %s899_s29 = smov 64   ;;  %s900_s30 = smov 4  }
  0x1b   :  { %37 = dma.hbm_to_vmem [thread:$0]  %s1095_s1, 2048, %s32_s27, [#allocation7], %s899_s29, %s899_s29, %s900_s30  }
  0x1c   :  { %889 = dma.done.wait [#allocation4], 8192  }
  0x1d   :  { %890 = vsyncadd [#allocation4], 4294959104 }
  0x1e   :  { %891 = dma.done.wait [#allocation7], 2048  }
  0x1f   :  { %892 = vsyncadd [#allocation7], 4294965248  ;;  %v805_v0 = vld [vmem:[#allocation6 + $0x78] sm:$0xff]   ;;  %v807_v2 = vld [vmem:[#allocation6 + $0x70] sm:$0xff]  }
  0x20   :  { %v806_v1 = vld [vmem:[#allocation6 + $0x38] sm:$0xff]   ;;  %667 = vmatprep.subr.bf16.mxu0 %v805_v0  ;;  %v808_v3 = vld [vmem:[#allocation6 + $0x30] sm:$0xff]   ;;  %v809_v4 = vld [vmem:[#allocation6 + $0x68] sm:$0xff]  }
  0x21   :  { %668 = vmatpush3.bf16.msra.mxu0 %v806_v1  ;;  %v810_v5 = vld [vmem:[#allocation6 + $0x28] sm:$0xff]   ;;  %v811_v6 = vld [vmem:[#allocation6 + $0x60] sm:$0xff]   ;;  %v813_v8 = vld [vmem:[#allocation6 + $0x58] sm:$0xff]  }
  0x22   :  { %669 = vmatprep.subr.bf16.mxu0 %v807_v2  ;;  %v812_v7 = vld [vmem:[#allocation6 + $0x20] sm:$0xff]   ;;  %v814_v9 = vld [vmem:[#allocation6 + $0x18] sm:$0xff]   ;;  %v815_v10 = vld [vmem:[#allocation6 + $0x50] sm:$0xff]  }
  0x23   :  { %v52_v11 = vld [vmem:[#allocation3 + $0x8] sm:$0xff]  ;;  %v54_v12 = vld [vmem:[#allocation3 + $0x18] sm:$0xff]  ;;  %v816_v14 = vld [vmem:[#allocation6 + $0x10] sm:$0xff]  }
  0x24   :  { %v116_v13 = vpack.c.bf16 %v54_v12, %v52_v11  ;;  %v817_v15 = vld [vmem:[#allocation6 + $0x48] sm:$0xff]   ;;  %v819_v17 = vld [vmem:[#allocation6 + $0x40] sm:$0xff]   ;;  %v53_v20 = vld [vmem:[#allocation3 + $0x10] sm:$0xff] }
  0x25   :  { %670 = vmatpush3.bf16.msra.mxu0 %v808_v3  ;;  %v818_v16 = vld [vmem:[#allocation6 + $0x8] sm:$0xff]   ;;  %v820_v18 = vld [vmem:[#allocation6] sm:$0xff]   ;;  %v58_v22 = vld [vmem:[#allocation3 + $0x38] sm:$0xff] }
  0x26   :  { %671 = vmatprep.subr.bf16.mxu0 %v809_v4  ;;  %314 = vmatprep.mubr.bf16.mxu0 %v116_v13  ;;  %v51_v19 = vld [vmem:[#allocation3] sm:$0xff]  ;;  %v56_v21 = vld [vmem:[#allocation3 + $0x28] sm:$0xff]  ;;  %v57_v26 = vld [vmem:[#allocation3 + $0x30] sm:$0xff] }
  0x27   :  { %v115_v23 = vpack.c.bf16 %v53_v20, %v51_v19  ;;  %v118_v24 = vpack.c.bf16 %v58_v22, %v56_v21  ;;  %v55_v25 = vld [vmem:[#allocation3 + $0x20] sm:$0xff]  ;;  %v60_v27 = vld [vmem:[#allocation3 + $0x48] sm:$0xff]  ;;  %v62_v28 = vld [vmem:[#allocation3 + $0x58] sm:$0xff] }
  0x28   :  { %v117_v29 = vpack.c.bf16 %v57_v26, %v55_v25  ;;  %v120_v30 = vpack.c.bf16 %v62_v28, %v60_v27  ;;  %v59_v31 = vld [vmem:[#allocation3 + $0x40] sm:$0xff]  ;;  %v61_v32 = vld [vmem:[#allocation3 + $0x50] sm:$0xff]  ;;  %v64_v33 = vld [vmem:[#allocation3 + $0x68] sm:$0xff] }
  0x29   :  { %672 = vmatpush3.bf16.msra.mxu0 %v810_v5  ;;  %v66_v34 = vld [vmem:[#allocation3 + $0x78] sm:$0xff]  ;;  %v119_v35 = vpack.c.bf16 %v61_v32, %v59_v31  ;;  %v63_v37 = vld [vmem:[#allocation3 + $0x60] sm:$0xff]  ;;  %v65_v38 = vld [vmem:[#allocation3 + $0x70] sm:$0xff] }
  0x2a   :  { %673 = vmatprep.subr.bf16.mxu0 %v811_v6  ;;  %v122_v36 = vpack.c.bf16 %v66_v34, %v64_v33  ;;  %v68_v39 = vld [vmem:[#allocation3 + $0x88] sm:$0xff]  ;;  %v70_v40 = vld [vmem:[#allocation3 + $0x98] sm:$0xff]  ;;  %v121_v41 = vpack.c.bf16 %v65_v38, %v63_v37  ;;  %v67_v43 = vld [vmem:[#allocation3 + $0x80] sm:$0xff] }
  0x2b   :  { %v124_v42 = vpack.c.bf16 %v70_v40, %v68_v39  ;;  %v69_v44 = vld [vmem:[#allocation3 + $0x90] sm:$0xff]  ;;  %v72_v45 = vld [vmem:[#allocation3 + $0xa8] sm:$0xff]  ;;  %v74_v46 = vld [vmem:[#allocation3 + $0xb8] sm:$0xff] }
  0x2c   :  { %v123_v47 = vpack.c.bf16 %v69_v44, %v67_v43  ;;  %v126_v48 = vpack.c.bf16 %v74_v46, %v72_v45  ;;  %v71_v49 = vld [vmem:[#allocation3 + $0xa0] sm:$0xff]  ;;  %v73_v50 = vld [vmem:[#allocation3 + $0xb0] sm:$0xff]  ;;  %v76_v51 = vld [vmem:[#allocation3 + $0xc8] sm:$0xff] }
  0x2d   :  { %674 = vmatpush3.bf16.msra.mxu0 %v812_v7  ;;  %v78_v52 = vld [vmem:[#allocation3 + $0xd8] sm:$0xff]  ;;  %v125_v53 = vpack.c.bf16 %v73_v50, %v71_v49  ;;  %v75_v55 = vld [vmem:[#allocation3 + $0xc0] sm:$0xff]  ;;  %v77_v56 = vld [vmem:[#allocation3 + $0xd0] sm:$0xff] }
  0x2e   :  { %675 = vmatprep.subr.bf16.mxu0 %v813_v8  ;;  %v128_v54 = vpack.c.bf16 %v78_v52, %v76_v51  ;;  %v80_v57 = vld [vmem:[#allocation3 + $0xe8] sm:$0xff]  ;;  %v82_v58 = vld [vmem:[#allocation3 + $0xf8] sm:$0xff]  ;;  %v127_v59 = vpack.c.bf16 %v77_v56, %v75_v55  ;;  %v79_v61 = vld [vmem:[#allocation3 + $0xe0] sm:$0xff] }
  0x2f   :  { %v130_v60 = vpack.c.bf16 %v82_v58, %v80_v57  ;;  %v81_v62 = vld [vmem:[#allocation3 + $0xf0] sm:$0xff]  ;;  %v84_v63 = vld [vmem:[#allocation3 + $0x108] sm:$0xff]  ;;  %v86_v0 = vld [vmem:[#allocation3 + $0x118] sm:$0xff] }
  0x30   :  { %v129_v1 = vpack.c.bf16 %v81_v62, %v79_v61  ;;  %v132_v2 = vpack.c.bf16 %v86_v0, %v84_v63  ;;  %v83_v3 = vld [vmem:[#allocation3 + $0x100] sm:$0xff]  ;;  %v85_v4 = vld [vmem:[#allocation3 + $0x110] sm:$0xff]  ;;  %v88_v5 = vld [vmem:[#allocation3 + $0x128] sm:$0xff] }
  0x31   :  { %676 = vmatpush3.bf16.msra.mxu0 %v814_v9  ;;  %v90_v6 = vld [vmem:[#allocation3 + $0x138] sm:$0xff]  ;;  %v131_v7 = vpack.c.bf16 %v85_v4, %v83_v3  ;;  %v87_v9 = vld [vmem:[#allocation3 + $0x120] sm:$0xff]  ;;  %v92_v11 = vld [vmem:[#allocation3 + $0x148] sm:$0xff] }
  0x32   :  { %677 = vmatprep.subr.bf16.mxu0 %v815_v10  ;;  %v134_v8 = vpack.c.bf16 %v90_v6, %v88_v5  ;;  %v89_v10 = vld [vmem:[#allocation3 + $0x130] sm:$0xff]  ;;  %v94_v12 = vld [vmem:[#allocation3 + $0x158] sm:$0xff]  ;;  %v95_v21 = vld [vmem:[#allocation3 + $0x160] sm:$0xff] }
  0x33   :  { %v133_v13 = vpack.c.bf16 %v89_v10, %v87_v9  ;;  %v97_v22 = vld [vmem:[#allocation3 + $0x170] sm:$0xff]  ;;  %v99_v27 = vld [vmem:[#allocation3 + $0x180] sm:$0xff] }
  0x34   :  { %v137_v25 = vpack.c.bf16 %v97_v22, %v95_v21  ;;  %v101_v28 = vld [vmem:[#allocation3 + $0x190] sm:$0xff]  ;;  %v103_v33 = vld [vmem:[#allocation3 + $0x1a0] sm:$0xff] }
  0x35   :  { %678 = vmatpush3.bf16.msra.mxu0 %v816_v14  ;;  %v136_v14 = vpack.c.bf16 %v94_v12, %v92_v11  ;;  %v139_v31 = vpack.c.bf16 %v101_v28, %v99_v27  ;;  %v105_v34 = vld [vmem:[#allocation3 + $0x1b0] sm:$0xff]  ;;  %v107_v39 = vld [vmem:[#allocation3 + $0x1c0] sm:$0xff] }
  0x36   :  { %679 = vmatprep.subr.bf16.mxu0 %v817_v15  ;;  %v91_v15 = vld [vmem:[#allocation3 + $0x140] sm:$0xff]  ;;  %v141_v37 = vpack.c.bf16 %v105_v34, %v103_v33  ;;  %v109_v40 = vld [vmem:[#allocation3 + $0x1d0] sm:$0xff] }
  0x37   :  { %v143_v43 = vpack.c.bf16 %v109_v40, %v107_v39  ;;  %v111_v45 = vld [vmem:[#allocation3 + $0x1e0] sm:$0xff]  ;;  %v113_v46 = vld [vmem:[#allocation3 + $0x1f0] sm:$0xff] }
  0x38   :  { %v942_v49 = vld [vmem:[%s1096_s2] ss:$0 sm:$0xff] }
  0x39   :  { %680 = vmatpush3.bf16.msra.mxu0 %v818_v16  ;;  %v93_v16 = vld [vmem:[#allocation3 + $0x150] sm:$0xff] }
  0x3a   :  { %681 = vmatprep.subr.bf16.mxu0 %v819_v17  ;;  %v96_v17 = vld [vmem:[#allocation3 + $0x168] sm:$0xff]  ;;  %v135_v19 = vpack.c.bf16 %v93_v16, %v91_v15 }
  0x3d   :  { %682 = vmatpush3.bf16.msra.mxu0 %v820_v18  ;;  %v98_v18 = vld [vmem:[#allocation3 + $0x178] sm:$0xff] }
  0x3e   :  { %v138_v20 = vpack.c.bf16 %v98_v18, %v96_v17 }
  0x40   :  { %315 = vmatmul.mubr.bf16.vlgmr.msra.gmra.mxu0 %v115_v23  ;;  %v100_v23 = vld [vmem:[#allocation3 + $0x188] sm:$0xff] }
  0x41   :  { %322 = vmatprep.mubr.bf16.mxu0 %v118_v24  ;;  %v102_v24 = vld [vmem:[#allocation3 + $0x198] sm:$0xff] }
  0x42   :  { %v140_v26 = vpack.c.bf16 %v102_v24, %v100_v23 }
  0x48   :  { %323 = vmatmul.mubr.bf16.gmra.mxu0 %v117_v29  ;;  %v104_v29 = vld [vmem:[#allocation3 + $0x1a8] sm:$0xff] }
  0x49   :  { %330 = vmatprep.mubr.bf16.mxu0 %v120_v30  ;;  %v106_v30 = vld [vmem:[#allocation3 + $0x1b8] sm:$0xff] }
  0x4a   :  { %v142_v32 = vpack.c.bf16 %v106_v30, %v104_v29 }
  0x50   :  { %331 = vmatmul.mubr.bf16.gmra.mxu0 %v119_v35  ;;  %v108_v35 = vld [vmem:[#allocation3 + $0x1c8] sm:$0xff] }
  0x51   :  { %338 = vmatprep.mubr.bf16.mxu0 %v122_v36  ;;  %v110_v36 = vld [vmem:[#allocation3 + $0x1d8] sm:$0xff] }
  0x52   :  { %v144_v38 = vpack.c.bf16 %v110_v36, %v108_v35 }
  0x58   :  { %339 = vmatmul.mubr.bf16.gmra.mxu0 %v121_v41  ;;  %v112_v41 = vld [vmem:[#allocation3 + $0x1e8] sm:$0xff] }
  0x59   :  { %346 = vmatprep.mubr.bf16.mxu0 %v124_v42  ;;  %v114_v42 = vld [vmem:[#allocation3 + $0x1f8] sm:$0xff] }
  0x5a   :  { %v146_v44 = vpack.c.bf16 %v114_v42, %v112_v41 }
  0x60   :  { %347 = vmatmul.mubr.bf16.gmra.mxu0 %v123_v47  ;;  %v145_v47 = vpack.c.bf16 %v113_v46, %v111_v45 }
  0x61   :  { %354 = vmatprep.mubr.bf16.mxu0 %v126_v48 }
  0x68   :  { %355 = vmatmul.mubr.bf16.gmra.mxu0 %v125_v53 }
  0x69   :  { %362 = vmatprep.mubr.bf16.mxu0 %v128_v54 }
  0x70   :  { %363 = vmatmul.mubr.bf16.gmra.mxu0 %v127_v59 }
  0x71   :  { %370 = vmatprep.mubr.bf16.mxu0 %v130_v60 }
  0x78   :  { %371 = vmatmul.mubr.bf16.gmra.mxu0 %v129_v1 }
  0x79   :  { %378 = vmatprep.mubr.bf16.mxu0 %v132_v2 }
  0x80   :  { %379 = vmatmul.mubr.bf16.gmra.mxu0 %v131_v7 }
  0x81   :  { %386 = vmatprep.mubr.bf16.mxu0 %v134_v8 }
  0x88   :  { %387 = vmatmul.mubr.bf16.gmra.mxu0 %v133_v13 }
  0x89   :  { %394 = vmatprep.mubr.bf16.mxu0 %v136_v14 }
  0x90   :  { %395 = vmatmul.mubr.bf16.gmra.mxu0 %v135_v19 }
  0x91   :  { %402 = vmatprep.mubr.bf16.mxu0 %v138_v20 }
  0x98   :  { %403 = vmatmul.mubr.bf16.gmra.mxu0 %v137_v25 }
  0x99   :  { %410 = vmatprep.mubr.bf16.mxu0 %v140_v26 }
  0xa0   :  { %411 = vmatmul.mubr.bf16.gmra.mxu0 %v139_v31 }
  0xa1   :  { %418 = vmatprep.mubr.bf16.mxu0 %v142_v32 }
  0xa8   :  { %419 = vmatmul.mubr.bf16.gmra.mxu0 %v141_v37 }
  0xa9   :  { %426 = vmatprep.mubr.bf16.mxu0 %v144_v38 }
  0xb0   :  { %427 = vmatmul.mubr.bf16.gmra.mxu0 %v143_v43 }
  0xb1   :  { %434 = vmatprep.mubr.bf16.mxu0 %v146_v44 }
  0xb8   :  { %435 = vmatmul.mubr.bf16.gmra.mxu0 %v145_v47 }
 0x100   :  { %v683_v48 = vpop.f32.mrf.mxu0 }
 0x102   :  { %v684_v50 = vpop.f32.mrf.mxu0 }
 0x103   :  { %v685_v51 = vadd.f32 %v684_v50, %v683_v48 }
 0x104   :  { %v686_v52 = vpop.f32.mrf.mxu0 }
 0x105   :  { %v317_v53 = vadd.f32 %v685_v51, %v942_v49 }
 0x106   :  { %v687_v54 = vpop.f32.mrf.mxu0 }
 0x107   :  { %v688_v55 = vadd.f32 %v687_v54, %v686_v52  ;;  %v475_v57 = vmul.f32 0.01, %v317_v53  ;;  %vm443_vm0 = vcmp.ge.f32.partialorder %v317_v53, 0.0 }
 0x108   :  { %v689_v56 = vpop.f32.mrf.mxu0 }
 0x109   :  { %v320_v58 = vadd.f32 %v688_v55, %v942_v49  ;;  %v947_v0 = vsel %vm443_vm0, %v317_v53, %v475_v57 }
 0x10a   :  { %v690_v59 = vpop.f32.mrf.mxu0 }
 0x10b   :  { %vm444_vm1 = vcmp.ge.f32.partialorder %v320_v58, 0.0  ;;  %v476_v60 = vmul.f32 0.01, %v320_v58  ;;  %v691_v61 = vadd.f32 %v690_v59, %v689_v56 }
 0x10c   :  { %v692_v62 = vpop.f32.mrf.mxu0 }
 0x10d   :  { %v325_v63 = vadd.f32 %v691_v61, %v942_v49  ;;  %v949_v1 = vsel %vm444_vm1, %v320_v58, %v476_v60 }
 0x10e   :  { %v693_v2 = vpop.f32.mrf.mxu0 }
 0x10f   :  { %v694_v4 = vadd.f32 %v693_v2, %v692_v62  ;;  %v477_v6 = vmul.f32 0.01, %v325_v63  ;;  %vm445_vm2 = vcmp.ge.f32.partialorder %v325_v63, 0.0 }
 0x110   :  { %v695_v5 = vpop.f32.mrf.mxu0 }
 0x111   :  { %v328_v7 = vadd.f32 %v694_v4, %v942_v49  ;;  %v955_v13 = vsel %vm445_vm2, %v325_v63, %v477_v6 }
 0x112   :  { %v696_v8 = vpop.f32.mrf.mxu0 }
 0x113   :  { %vm446_vm3 = vcmp.ge.f32.partialorder %v328_v7, 0.0  ;;  %v478_v9 = vmul.f32 0.01, %v328_v7  ;;  %v697_v10 = vadd.f32 %v696_v8, %v695_v5 }
 0x114   :  { %v698_v11 = vpop.f32.mrf.mxu0 }
 0x115   :  { %v333_v12 = vadd.f32 %v697_v10, %v942_v49  ;;  %v957_v14 = vsel %vm446_vm3, %v328_v7, %v478_v9 }
 0x116   :  { %v699_v15 = vpop.f32.mrf.mxu0  ;;  %v541_v16 = vpack.c.bf16 %v957_v14, %v955_v13 }
 0x117   :  { %v700_v17 = vadd.f32 %v699_v15, %v698_v11  ;;  %v479_v19 = vmul.f32 0.01, %v333_v12  ;;  %vm447_vm4 = vcmp.ge.f32.partialorder %v333_v12, 0.0 }
 0x118   :  { %v701_v18 = vpop.f32.mrf.mxu0 }
 0x119   :  { %v336_v20 = vadd.f32 %v700_v17, %v942_v49  ;;  %v963_v26 = vsel %vm447_vm4, %v333_v12, %v479_v19 }
 0x11a   :  { %v702_v21 = vpop.f32.mrf.mxu0 }
 0x11b   :  { %vm448_vm5 = vcmp.ge.f32.partialorder %v336_v20, 0.0  ;;  %v480_v22 = vmul.f32 0.01, %v336_v20  ;;  %v703_v23 = vadd.f32 %v702_v21, %v701_v18 }
 0x11c   :  { %v704_v24 = vpop.f32.mrf.mxu0 }
 0x11d   :  { %v341_v25 = vadd.f32 %v703_v23, %v942_v49  ;;  %v965_v27 = vsel %vm448_vm5, %v336_v20, %v480_v22 }
 0x11e   :  { %v705_v28 = vpop.f32.mrf.mxu0  ;;  %v542_v29 = vpack.c.bf16 %v965_v27, %v963_v26  ;;  %v598_v26 = vstv %s1098_s4  ;;  %s902_s4 = smov [#allocation8]  }
 0x11f   :  { %v706_v30 = vadd.f32 %v705_v28, %v704_v24  ;;  %v481_v32 = vmul.f32 0.01, %v341_v25  ;;  %vm449_vm6 = vcmp.ge.f32.partialorder %v341_v25, 0.0  ;;  %s640_s10 = sshll.u32 %s902_s4, 4  ;;  %s641_s10 = int_to_ptr.vmem [resolvable:$true] %s640_s10 }
 0x120   :  { %v707_v31 = vpop.f32.mrf.mxu0  ;;  %s869_s11 = scalar_lea.vmem %s641_s10, 32  ;;  %p874_p11 = scmp.lt.s32.totalorder %s641_s10, %s641_s10 }
 0x121   :  { %v344_v33 = vadd.f32 %v706_v30, %v942_v49  ;;  %v971_v39 = vsel %vm449_vm6, %v341_v25, %v481_v32  ;;  %v1005_v32 = vld [vmem:[%s1097_s3] sm:$0xf]  ;;  %p870_p10 = scmp.ne.s32.totalorder %s641_s10, %s869_s11  ;;  %p875_p12 = scmp.lt.s32.totalorder %s869_s11, %s869_s11 }
 0x122   :  { %v708_v34 = vpop.f32.mrf.mxu0  ;;  %795 = vmatprep.mubr.bf16.mxu1 %v1005_v32 }
 0x123   :  { %vm450_vm7 = vcmp.ge.f32.partialorder %v344_v33, 0.0  ;;  %v482_v35 = vmul.f32 0.01, %v344_v33  ;;  %v709_v36 = vadd.f32 %v708_v34, %v707_v31  ;;  %p876_p13 = por %p875_p12, %p874_p11 }
 0x124   :  { %v710_v37 = vpop.f32.mrf.mxu0 }
 0x125   :  { %v349_v38 = vadd.f32 %v709_v36, %v942_v49  ;;  %v973_v40 = vsel %vm450_vm7, %v344_v33, %v482_v35  ;;  %p877_p0 = pnand %p876_p13, %p870_p10 }
 0x126   :  { %v711_v41 = vpop.f32.mrf.mxu0  ;;  %v543_v42 = vpack.c.bf16 %v973_v40, %v971_v39  ;;  %v1101_v39 = vpack.c.bf16 %v949_v1, %v947_v0 }
 0x127   :  { %v712_v43 = vadd.f32 %v711_v41, %v710_v37  ;;  %v483_v45 = vmul.f32 0.01, %v349_v38  ;;  %vm451_vm8 = vcmp.ge.f32.partialorder %v349_v38, 0.0 }
 0x128   :  { %v713_v44 = vpop.f32.mrf.mxu0 }
 0x129   :  { %v352_v46 = vadd.f32 %v712_v43, %v942_v49  ;;  %v979_v53 = vsel %vm451_vm8, %v349_v38, %v483_v45 }
 0x12a   :  { %v714_v47 = vpop.f32.mrf.mxu0 }
 0x12b   :  { %vm452_vm9 = vcmp.ge.f32.partialorder %v352_v46, 0.0  ;;  %v484_v48 = vmul.f32 0.01, %v352_v46  ;;  %v715_v50 = vadd.f32 %v714_v47, %v713_v44 }
 0x12c   :  { %v716_v51 = vpop.f32.mrf.mxu0 }
 0x12d   :  { %v357_v52 = vadd.f32 %v715_v50, %v942_v49  ;;  %v981_v54 = vsel %vm452_vm9, %v352_v46, %v484_v48 }
 0x12e   :  { %v717_v55 = vpop.f32.mrf.mxu0  ;;  %v544_v56 = vpack.c.bf16 %v981_v54, %v979_v53 }
 0x12f   :  { %v718_v57 = vadd.f32 %v717_v55, %v716_v51  ;;  %v485_v59 = vmul.f32 0.01, %v357_v52  ;;  %vm453_vm10 = vcmp.ge.f32.partialorder %v357_v52, 0.0 }
 0x130   :  { %v719_v58 = vpop.f32.mrf.mxu0 }
 0x131   :  { %v360_v60 = vadd.f32 %v718_v57, %v942_v49  ;;  %v987_v5 = vsel %vm453_vm10, %v357_v52, %v485_v59 }
 0x132   :  { %v720_v61 = vpop.f32.mrf.mxu0 }
 0x133   :  { %vm454_vm11 = vcmp.ge.f32.partialorder %v360_v60, 0.0  ;;  %v486_v62 = vmul.f32 0.01, %v360_v60  ;;  %v721_v63 = vadd.f32 %v720_v61, %v719_v58 }
 0x134   :  { %v722_v2 = vpop.f32.mrf.mxu0 }
 0x135   :  { %v365_v4 = vadd.f32 %v721_v63, %v942_v49  ;;  %v989_v6 = vsel %vm454_vm11, %v360_v60, %v486_v62 }
 0x136   :  { %v723_v7 = vpop.f32.mrf.mxu0  ;;  %v545_v8 = vpack.c.bf16 %v989_v6, %v987_v5 }
 0x137   :  { %v724_v9 = vadd.f32 %v723_v7, %v722_v2  ;;  %v487_v11 = vmul.f32 0.01, %v365_v4  ;;  %vm455_vm12 = vcmp.ge.f32.partialorder %v365_v4, 0.0 }
 0x138   :  { %v725_v10 = vpop.f32.mrf.mxu0 }
 0x139   :  { %v368_v12 = vadd.f32 %v724_v9, %v942_v49  ;;  %v995_v21 = vsel %vm455_vm12, %v365_v4, %v487_v11 }
 0x13a   :  { %v726_v15 = vpop.f32.mrf.mxu0 }
 0x13b   :  { %vm456_vm13 = vcmp.ge.f32.partialorder %v368_v12, 0.0  ;;  %v488_v17 = vmul.f32 0.01, %v368_v12  ;;  %v727_v18 = vadd.f32 %v726_v15, %v725_v10 }
 0x13c   :  { %v728_v19 = vpop.f32.mrf.mxu0 }
 0x13d   :  { %v373_v20 = vadd.f32 %v727_v18, %v942_v49  ;;  %v997_v22 = vsel %vm456_vm13, %v368_v12, %v488_v17 }
 0x13e   :  { %v729_v23 = vpop.f32.mrf.mxu0  ;;  %v546_v24 = vpack.c.bf16 %v997_v22, %v995_v21 }
 0x13f   :  { %v730_v25 = vadd.f32 %v729_v23, %v728_v19  ;;  %v489_v31 = vmul.f32 0.01, %v373_v20  ;;  %vm457_vm14 = vcmp.ge.f32.partialorder %v373_v20, 0.0 }
 0x140   :  { %v731_v28 = vpop.f32.mrf.mxu0 }
 0x141   :  { %v376_v30 = vadd.f32 %v730_v25, %v942_v49  ;;  %v1009_v38 = vsel %vm457_vm14, %v373_v20, %v489_v31 }
 0x142   :  { %v732_v33 = vpop.f32.mrf.mxu0 }
 0x143   :  { %v733_v34 = vadd.f32 %v732_v33, %v731_v28  ;;  %vm458_vm15 = vcmp.ge.f32.partialorder %v376_v30, 0.0  ;;  %v490_v35 = vmul.f32 0.01, %v376_v30 }
 0x144   :  { %v734_v36 = vpop.f32.mrf.mxu0 }
 0x145   :  { %v381_v37 = vadd.f32 %v733_v34, %v942_v49  ;;  %v1011_v41 = vsel %vm458_vm15, %v376_v30, %v490_v35 }
 0x146   :  { %v735_v43 = vpop.f32.mrf.mxu0  ;;  %v547_v44 = vpack.c.bf16 %v1011_v41, %v1009_v38 }
 0x147   :  { %v736_v45 = vadd.f32 %v735_v43, %v734_v36  ;;  %v491_v47 = vmul.f32 0.01, %v381_v37  ;;  %vm459_vm0 = vcmp.ge.f32.partialorder %v381_v37, 0.0 }
 0x148   :  { %v737_v46 = vpop.f32.mrf.mxu0 }
 0x149   :  { %v384_v48 = vadd.f32 %v736_v45, %v942_v49  ;;  %v1017_v58 = vsel %vm459_vm0, %v381_v37, %v491_v47 }
 0x14a   :  { %v738_v50 = vpop.f32.mrf.mxu0 }
 0x14b   :  { %vm460_vm1 = vcmp.ge.f32.partialorder %v384_v48, 0.0  ;;  %v492_v51 = vmul.f32 0.01, %v384_v48  ;;  %v739_v52 = vadd.f32 %v738_v50, %v737_v46 }
 0x14c   :  { %v740_v55 = vpop.f32.mrf.mxu0 }
 0x14d   :  { %v389_v57 = vadd.f32 %v739_v52, %v942_v49  ;;  %v1019_v59 = vsel %vm460_vm1, %v384_v48, %v492_v51 }
 0x14e   :  { %v741_v60 = vpop.f32.mrf.mxu0 }
 0x14f   :  { %v742_v62 = vadd.f32 %v741_v60, %v740_v55  ;;  %v493_v2 = vmul.f32 0.01, %v389_v57  ;;  %vm461_vm2 = vcmp.ge.f32.partialorder %v389_v57, 0.0 }
 0x150   :  { %v743_v63 = vpop.f32.mrf.mxu0 }
 0x151   :  { %v392_v4 = vadd.f32 %v742_v62, %v942_v49  ;;  %v1025_v15 = vsel %vm461_vm2, %v389_v57, %v493_v2 }
 0x152   :  { %v744_v7 = vpop.f32.mrf.mxu0 }
 0x153   :  { %vm462_vm3 = vcmp.ge.f32.partialorder %v392_v4, 0.0  ;;  %v494_v9 = vmul.f32 0.01, %v392_v4  ;;  %v745_v10 = vadd.f32 %v744_v7, %v743_v63 }
 0x154   :  { %v746_v11 = vpop.f32.mrf.mxu0 }
 0x155   :  { %v397_v12 = vadd.f32 %v745_v10, %v942_v49  ;;  %v1027_v17 = vsel %vm462_vm3, %v392_v4, %v494_v9 }
 0x156   :  { %v747_v18 = vpop.f32.mrf.mxu0  ;;  %v549_v19 = vpack.c.bf16 %v1027_v17, %v1025_v15 }
 0x157   :  { %v748_v20 = vadd.f32 %v747_v18, %v746_v11  ;;  %v495_v25 = vmul.f32 0.01, %v397_v12  ;;  %vm463_vm4 = vcmp.ge.f32.partialorder %v397_v12, 0.0 }
 0x158   :  { %v1031_v23 = vpop.f32.mrf.mxu0 }
 0x159   :  { %v400_v28 = vadd.f32 %v748_v20, %v942_v49  ;;  %v1036_v34 = vsel %vm463_vm4, %v397_v12, %v495_v25 }
 0x15a   :  { %v1034_v30 = vpop.f32.mrf.mxu0 }
 0x15b   :  { %vm464_vm5 = vcmp.ge.f32.partialorder %v400_v28, 0.0  ;;  %v496_v31 = vmul.f32 0.01, %v400_v28  ;;  %v751_v38 = vadd.f32 %v1034_v30, %v1031_v23 }
 0x15c   :  { %v752_v33 = vpop.f32.mrf.mxu0 }
 0x15d   :  { %v1038_v35 = vsel %vm464_vm5, %v400_v28, %v496_v31 }
 0x15e   :  { %v753_v36 = vpop.f32.mrf.mxu0  ;;  %v550_v37 = vpack.c.bf16 %v1038_v35, %v1036_v34 }
 0x160   :  { %v755_v43 = vpop.f32.mrf.mxu0 }
 0x162   :  { %v756_v45 = vpop.f32.mrf.mxu0 }
 0x164   :  { %v758_v46 = vpop.f32.mrf.mxu0 }
 0x166   :  { %v759_v47 = vpop.f32.mrf.mxu0 }
 0x168   :  { %v761_v48 = vpop.f32.mrf.mxu0 }
 0x16a   :  { %v762_v50 = vpop.f32.mrf.mxu0 }
 0x16c   :  { %v764_v51 = vpop.f32.mrf.mxu0 }
 0x16e   :  { %v765_v52 = vpop.f32.mrf.mxu0 }
 0x16f   :  { %v766_v28 = vadd.f32 %v765_v52, %v764_v51 }
 0x170   :  { %v767_v55 = vpop.f32.mrf.mxu0 }
 0x172   :  { %v768_v57 = vpop.f32.mrf.mxu0 }
 0x173   :  { %v769_v7 = vadd.f32 %v768_v57, %v767_v55  ;;  %v424_v57 = vadd.f32 %v766_v28, %v942_v49 }
 0x174   :  { %v770_v60 = vpop.f32.mrf.mxu0 }
 0x175   :  { %v429_v20 = vadd.f32 %v769_v7, %v942_v49  ;;  %vm470_vm10 = vcmp.ge.f32.partialorder %v424_v57, 0.0 }
 0x176   :  { %v771_v62 = vpop.f32.mrf.mxu0 }
 0x177   :  { %v772_v2 = vadd.f32 %v771_v62, %v770_v60  ;;  %v763_v60 = vadd.f32 %v762_v50, %v761_v48  ;;  %v503_v62 = vmul.f32 0.01, %v429_v20  ;;  %vm471_vm9 = vcmp.ge.f32.partialorder %v429_v20, 0.0 }
 0x178   :  { %v773_v63 = vpop.f32.mrf.mxu0  ;;  %v757_v48 = vadd.f32 %v756_v45, %v755_v43  ;;  %v405_v45 = vadd.f32 %v751_v38, %v942_v49 }
 0x179   :  { %v432_v11 = vadd.f32 %v772_v2, %v942_v49  ;;  %v421_v7 = vadd.f32 %v763_v60, %v942_v49  ;;  %v535_v51 = vsel %vm471_vm9, %v429_v20, %v503_v62 }
 0x17a   :  { %v774_v4 = vpop.f32.mrf.mxu0  ;;  %v497_v21 = vmul.f32 0.01, %v405_v45  ;;  %vm465_vm15 = vcmp.ge.f32.partialorder %v405_v45, 0.0 }
 0x17b   :  { %v775_v9 = vadd.f32 %v774_v4, %v773_v63  ;;  %v504_v31 = vmul.f32 0.01, %v432_v11  ;;  %vm472_vm6 = vcmp.ge.f32.partialorder %v432_v11, 0.0  ;;  %v501_v50 = vmul.f32 0.01, %v421_v7 }
 0x17c   :  { %v776_v10 = vpop.f32.mrf.mxu0  ;;  %vm469_vm11 = vcmp.ge.f32.partialorder %v421_v7, 0.0 }
 0x17d   :  { %v437_v12 = vadd.f32 %v775_v9, %v942_v49  ;;  %v536_v4 = vsel %vm472_vm6, %v432_v11, %v504_v31  ;;  %v413_v11 = vadd.f32 %v757_v48, %v942_v49 }
 0x17e   :  { %v777_v18 = vpop.f32.mrf.mxu0  ;;  %v554_v52 = vpack.c.bf16 %v536_v4, %v535_v51 }
 0x17f   :  { %v778_v25 = vadd.f32 %v777_v18, %v776_v10  ;;  %v505_v61 = vmul.f32 0.01, %v437_v12  ;;  %vm473_vm7 = vcmp.ge.f32.partialorder %v437_v12, 0.0  ;;  %v760_v10 = vadd.f32 %v759_v47, %v758_v46 }
 0x180   :  { %v502_v18 = vmul.f32 0.01, %v424_v57  ;;  %v499_v41 = vmul.f32 0.01, %v413_v11  ;;  %vm467_vm13 = vcmp.ge.f32.partialorder %v413_v11, 0.0 }
 0x181   :  { %v440_v3 = vadd.f32 %v778_v25, %v942_v49  ;;  %v537_v63 = vsel %vm473_vm7, %v437_v12, %v505_v61  ;;  %v533_v12 = vsel %vm469_vm11, %v421_v7, %v501_v50  ;;  %v754_v25 = vadd.f32 %v753_v36, %v752_v33 }
 0x182   :  { %v534_v61 = vsel %vm470_vm10, %v424_v57, %v502_v18  ;;  %v531_v46 = vsel %vm467_vm13, %v413_v11, %v499_v41 }
 0x183   :  { %vm474_vm8 = vcmp.ge.f32.partialorder %v440_v3, 0.0  ;;  %v506_v55 = vmul.f32 0.01, %v440_v3  ;;  %v553_v20 = vpack.c.bf16 %v534_v61, %v533_v12 }
 0x185   :  { %v538_v2 = vsel %vm474_vm8, %v440_v3, %v506_v55  ;;  %v416_v3 = vadd.f32 %v760_v10, %v942_v49 }
 0x186   :  { %v555_v9 = vpack.c.bf16 %v538_v2, %v537_v63 }
 0x187   :  { %v500_v28 = vmul.f32 0.01, %v416_v3  ;;  %vm468_vm12 = vcmp.ge.f32.partialorder %v416_v3, 0.0 }
 0x188   :  { %779 = vmatprep.subr.bf16.mxu1 %v555_v9 }
 0x189   :  { %780 = vmatpush3.bf16.xpose.msra.mxu1 %v547_v44  ;;  %v408_v44 = vadd.f32 %v754_v25, %v942_v49  ;;  %v532_v43 = vsel %vm468_vm12, %v416_v3, %v500_v28  ;;  %v1100_v49 = vpack.c.bf16 %v1019_v59, %v1017_v58  ;;  %v617_v58 = vlaneseq }
 0x18a   :  { %781 = vmatprep.subr.bf16.mxu1 %v554_v52  ;;  %v552_v47 = vpack.c.bf16 %v532_v43, %v531_v46 }
 0x18b   :  { %v498_v33 = vmul.f32 0.01, %v408_v44  ;;  %vm466_vm14 = vcmp.ge.f32.partialorder %v408_v44, 0.0  ;;  %v618_v15 = vshrl.u32 %v617_v58, 7  ;;  %vm631_vm0 = vcmp.lt.s32.totalorder %v617_v58, 256 }
 0x18d   :  { %v530_v22 = vsel %vm466_vm14, %v408_v44, %v498_v33 }
 0x191   :  { %782 = vmatpush3.bf16.xpose.msra.mxu1 %v546_v24  ;;  %v529_v24 = vsel %vm465_vm15, %v405_v45, %v497_v21 }
 0x192   :  { %783 = vmatprep.subr.bf16.mxu1 %v553_v20  ;;  %v551_v23 = vpack.c.bf16 %v530_v22, %v529_v24 }
 0x199   :  { %784 = vmatpush3.bf16.xpose.msra.mxu1 %v545_v8  ;;  %v901_v8 = vmov 1966171168  }
 0x19a   :  { %785 = vmatprep.subr.bf16.mxu1 %v552_v47 }
 0x1a1   :  { %786 = vmatpush3.bf16.xpose.msra.mxu1 %v544_v56 }
 0x1a2   :  { %787 = vmatprep.subr.bf16.mxu1 %v551_v23 }
 0x1a9   :  { %788 = vmatpush3.bf16.xpose.msra.mxu1 %v543_v42 }
 0x1aa   :  { %789 = vmatprep.subr.bf16.mxu1 %v550_v37 }
 0x1b1   :  { %790 = vmatpush3.bf16.xpose.msra.mxu1 %v542_v29 }
 0x1b2   :  { %791 = vmatprep.subr.bf16.mxu1 %v549_v19 }
 0x1b9   :  { %792 = vmatpush3.bf16.xpose.msra.mxu1 %v541_v16 }
 0x1ba   :  { %793 = vmatprep.subr.bf16.mxu1 %v1100_v49 }
 0x1c1   :  { %794 = vmatpush3.bf16.xpose.msra.mxu1 %v1101_v39 }
 0x1c8   :  { %796 = vmatmul.mubr.bf16.vlgmr.msra.gmra.mxu1 %v1005_v32  ;;  %v615_v32 = vunpack.c.l.s4 %v901_v8 }
 0x1ca   :  { %v616_v59 = vunpack.c.0.s8 %v615_v32 }
 0x1cc   :  { %v619_v19 = vsub.s32 %v616_v59, %v618_v15 }
 0x288   :  { %v590_v27 = vpop.f32.mrf.mxu1 }
 0x289   :  { %v599_v29 = vadd.f32 %v598_v26, %v590_v27 }
 0x28a   :  { %v592_v40 = vpop.f32.mrf.mxu1 }
 0x28b   :  { %v601_v42 = vsub.f32 0.0, %v599_v29  ;;  %v600_v13 = vadd.f32 %v598_v26, %v592_v40 }
 0x28c   :  { %v594_v14 = vpop.f32.mrf.mxu1 }
 0x28d   :  { %v603_v16 = vmul.f32 1.442695, %v601_v42  ;;  %v602_v53 = vsub.f32 0.0, %v600_v13 }
 0x28e   :  { %v595_v54 = vpop.f32.mrf.mxu1 }
 0x28f   :  { %821 = vpow2.f32 %v603_v16  ;;  %v605_v56 = vmul.f32 1.442695, %v602_v53 }
 0x291   :  { %823 = vpow2.f32 %v605_v56 }
 0x29c   :  { %v822_v0 = vpop.eup %821 }
 0x29d   :  { %v607_v1 = vadd.f32 1.0, %v822_v0 }
 0x29e   :  { %v824_v5 = vpop.eup %823 }
 0x29f   :  { %v608_v6 = vadd.f32 1.0, %v824_v5  ;;  %825 = vrcp.f32 %v607_v1 }
 0x2a1   :  { %827 = vrcp.f32 %v608_v6 }
 0x2ac   :  { %v826_v17 = vpop.eup %825 }
 0x2ae   :  { %v828_v30 = vpop.eup %827 }
 0x2af   :  { %v613_v34 = vcombine.low %v826_v17, %v828_v30 }
 0x2b1   :  { %v620_v35 = vrot.slane %v613_v34, %v619_v19 }
 0x2b3   :  { %v627_v36 = vrot.slane %v620_v35, %v619_v19 }
 0x2b5   :  { %633 = vst.msk [vmem:[#allocation8] sm:$0x3] %vm631_vm0, %v627_v36 }
 0x2b6   :  { %880 = shalt.err (!%p877_p0)
}
 0x2b7   :  { %643 = dma.vmem_to_hbm [thread:$0]  %s641_s10, 32, %s1099_s5, [#allocation5]  }
 0x2b8   :  { %893 = dma.done.wait [#allocation5], 32  }
 0x2b9   :  { %894 = vsyncadd [#allocation5], 4294967264 }
 0x2ba   :  { %647 = vsyncpa [#allocation4], 1 }
 0x2bb   :  { %648 = vsyncpa [#allocation7], 1 }
 0x2bc   :  { %649 = vsyncpa [#allocation5], 1 }

</bundles_post_ra>
